<compile_context>
chip_gen: v5e
topology: v5e:2x2
jax: 0.10.0
libtpu: 0.0.40
codegen_flags: <defaults>
</compile_context>

<pallas_src>
import functools

import jax
import jax.numpy as jnp
from jax.experimental import pallas as pl
from jax.experimental.pallas import tpu as pltpu


def netvlad_kernel(x_ref, w_ref, b_ref, c_ref, o_ref, *, p_valid):
    # x_ref: (B, C, P) bf16 | w_ref: (K, C) bf16 | b_ref: (K, 1) f32
    # c_ref: (K, C) f32     | o_ref: (B, K, C) f32
    K = c_ref.shape[0]
    P = x_ref.shape[2]

    # Hoisted (loop-invariant); only materialized when the lane axis is padded.
    if p_valid < P:
        lane_ok = jax.lax.broadcasted_iota(jnp.int32, (K, P), 1) < p_valid
    else:
        lane_ok = None

    def body(bi, carry):
        xb = x_ref[bi]                                                    # (C, P) bf16

        # 1x1 conv over channels (single-pass bf16 MXU, f32 accumulate):
        # logits[k, p] = w[k, :] . x[:, p] + b[k]
        logits = jnp.dot(w_ref[...], xb,
                         preferred_element_type=jnp.float32) + b_ref[...]  # (K, P)

        # softmax over clusters (sublane axis 0)
        logits = logits - jnp.max(logits, axis=0, keepdims=True)
        e = jnp.exp(logits)
        s = e * pl.reciprocal(jnp.sum(e, axis=0, keepdims=True),
                              approx=False)                               # (K, P) f32
        if lane_ok is not None:
            s = jnp.where(lane_ok, s, 0.0)       # pad columns: zero assignment

        # cluster mass: lane-axis reduce (XLU) -> (K, 1)
        a = jnp.sum(s, axis=1, keepdims=True)

        # sx[k, c] = sum_p s[k, p] * x[c, p]  (bf16 MXU, f32 accumulate)
        sx = jax.lax.dot_general(s.astype(xb.dtype), xb,
                                 (((1,), (1,)), ((), ())),
                                 preferred_element_type=jnp.float32)      # (K, C)

        vlad = sx - c_ref[...] * a                                        # (K, C)

        # intra-normalization over C: x / max(||x||, 1e-12) == x * rsqrt(max(||x||^2, 1e-24))
        ss = jnp.sum(vlad * vlad, axis=-1, keepdims=True)                 # (K, 1)
        r = jax.lax.rsqrt(jnp.maximum(ss, 1e-24))
        vlad = vlad * r

        # global L2 norm from the row sums: sum_k ||row_k||^2 = sum_k ss_k * r_k^2
        gss = jnp.sum(ss * (r * r))
        vlad = vlad * jax.lax.rsqrt(jnp.maximum(gss, 1e-24))

        o_ref[bi] = vlad
        return carry

    # Real loop (not a Python unroll): live ranges stay bounded to one sample,
    # independent of block_batch, so no spill vld/vst traffic at large blocks.
    jax.lax.fori_loop(0, x_ref.shape[0], body, None)


def _netvlad_call(x, w, b, cent, block_batch, p_valid, vmem_limit):
    n, C, P = x.shape
    K = cent.shape[0]
    kernel = functools.partial(netvlad_kernel, p_valid=p_valid)
    return pl.pallas_call(
        kernel,
        out_shape=jax.ShapeDtypeStruct((n, K, C), jnp.float32),
        grid_spec=pltpu.PrefetchScalarGridSpec(
            num_scalar_prefetch=0,
            grid=(n // block_batch,),
            in_specs=[
                pl.BlockSpec((block_batch, C, P), lambda i: (i, 0, 0)),
                pl.BlockSpec((K, C), lambda i: (0, 0)),
                pl.BlockSpec((K, 1), lambda i: (0, 0)),
                pl.BlockSpec((K, C), lambda i: (0, 0)),
            ],
            out_specs=pl.BlockSpec((block_batch, K, C), lambda i: (i, 0, 0)),
        ),
        compiler_params=pltpu.CompilerParams(
            dimension_semantics=("parallel",),
            vmem_limit_bytes=vmem_limit,
        ),
    )(x, w, b, cent)


def netvlad_forward(x_nchw, conv_w, conv_b, centroids, *, block_batch=None):
    """x_nchw: (N, C, H, W); conv_w: (K, C, 1, 1); conv_b: (K,); centroids: (K, C)."""
    N, C, H, W = x_nchw.shape
    K = centroids.shape[0]
    P = H * W

    # x dominates HBM traffic -> ship it (and w) as bf16; small params stay f32.
    # reshape of NCHW to (N, C, P) is a free relayout (no transpose).
    x = x_nchw.reshape(N, C, P).astype(jnp.bfloat16)           # (N, C, P)
    w = conv_w.reshape(K, C).astype(jnp.bfloat16)              # (K, C)
    b = conv_b.reshape(K, 1).astype(jnp.float32)               # (K, 1)
    cent = centroids.astype(jnp.float32)                       # (K, C)

    # Lane-dense spatial axis: pad P to a multiple of 128 (pad columns' soft
    # assignment is masked to zero inside the kernel).
    p_pad = ((P + 127) // 128) * 128
    if p_pad != P:
        x = jnp.pad(x, ((0, 0), (0, 0), (0, p_pad - P)))

    bytes_per_sample = 2 * C * p_pad + 4 * K * C               # bf16 x block + f32 out block

    # ----- samples per grid step ---------------------------------------------
    if block_batch is None:
        budget = 8 << 20                                       # double-buffered block budget
        cap = max(1, budget // (2 * bytes_per_sample))
        cap = min(cap, 32, N)                                  # fori_loop bounds pressure -> cap 32
        if N >= 2:
            cap = min(cap, max(1, N // 2))                     # >=2 grid steps -> both v7x TCs busy
        # Largest divisor of N within the cap -> zero padded/wasted samples.
        bb = max(d for d in range(1, cap + 1) if N % d == 0)
        # Awkward N (e.g. prime): a tiny divisor leaves per-step overhead
        # unamortized; take the cap and run the remainder as a tail block.
        if bb < cap // 2 and cap >= 8:
            bb = cap
        block_batch = bb
    block_batch = int(max(1, min(block_batch, N)))

    # VMEM limit from the actual footprint (double-buffered x/out blocks plus
    # resident params), ~1.5x headroom, floored at 16 MiB, well under v7x's
    # 64 MiB physical VMEM.
    footprint = 2 * block_batch * bytes_per_sample + 2 * (4 * K * C + 2 * K * C + 4 * K)
    vmem_limit = int(min(max(int(1.5 * footprint), 16 << 20), 32 << 20))

    n_main = (N // block_batch) * block_batch
    if n_main == N:
        out = _netvlad_call(x, w, b, cent, block_batch, P, vmem_limit)
    else:
        # Remainder handled by a second call with a smaller block: no padded samples.
        out = jnp.concatenate(
            [_netvlad_call(x[:n_main], w, b, cent, block_batch, P, vmem_limit),
             _netvlad_call(x[n_main:], w, b, cent, N - n_main, P, vmem_limit)],
            axis=0)

    return out.reshape(N, K * C)


def netvlad_reference(x_nchw, conv_w, conv_b, centroids):
    """Pure-JAX f32 reference mirroring the PyTorch forward."""
    N, C, H, W = x_nchw.shape
    K = centroids.shape[0]
    P = H * W
    x_flat = x_nchw.reshape(N, C, P)                                   # (N, C, P)
    logits = jnp.einsum('kc,ncp->nkp', conv_w.reshape(K, C), x_flat) + conv_b[None, :, None]
    soft = jax.nn.softmax(logits, axis=1)                              # (N, K, P)
    residual = x_flat[:, None, :, :] - centroids[None, :, :, None]     # (N, K, C, P)
    residual = residual * soft[:, :, None, :]
    vlad = residual.sum(axis=-1)                                       # (N, K, C)
    vlad = vlad / jnp.maximum(jnp.linalg.norm(vlad, axis=2, keepdims=True), 1e-12)
    vlad = vlad.reshape(N, K * C)
    vlad = vlad / jnp.maximum(jnp.linalg.norm(vlad, axis=1, keepdims=True), 1e-12)
    return vlad


if __name__ == "__main__":
    # TODO(synk): init_params / initialize_netvlad_layer (KNN/k-means init) are
    # host-side training utilities with no kernel equivalent; only forward() is implemented.
    # Module defaults: dim=128, clusters_num=64.  Spatial 16x16 -> P=256 (lane-dense).
    # N=6 -> auto block_batch=3 with 2 grid steps (exercises the in-kernel loop
    # and megacore-parallel grid).
    N, C, H, W = 6, 128, 16, 16
    K = 64

    key = jax.random.PRNGKey(0)
    kx, kw, kb, kc = jax.random.split(key, 4)
    x = jax.random.normal(kx, (N, C, H, W), dtype=jnp.float32)
    conv_w = 0.1 * jax.random.normal(kw, (K, C, 1, 1), dtype=jnp.float32)
    conv_b = 0.1 * jax.random.normal(kb, (K,), dtype=jnp.float32)
    centroids = jax.random.uniform(kc, (K, C), dtype=jnp.float32)

    ref = netvlad_reference(x, conv_w, conv_b, centroids)

    out = jax.block_until_ready(netvlad_forward(x, conv_w, conv_b, centroids))
    assert out.shape == (N, K * C)
    err = float(jnp.max(jnp.abs(out - ref)))
    assert err < 5e-3, f"max abs err {err}"

    # Also exercise the non-divisor (main + tail pallas_call) path.
    out2 = jax.block_until_ready(
        netvlad_forward(x, conv_w, conv_b, centroids, block_batch=4))
    err2 = float(jnp.max(jnp.abs(out2 - ref)))
    assert err2 < 5e-3, f"max abs err (tail path) {err2}"

    print("KERNEL_OK")
</pallas_src>

<mosaic_0001>
module attributes {stable_mosaic.version = 11 : i64} {
  func.func @netvlad_kernel(%arg0: i32, %arg1: memref<3x128x256xbf16, #tpu.memory_space<vmem>>, %arg2: memref<64x128xbf16, #tpu.memory_space<vmem>>, %arg3: memref<64x1xf32, #tpu.memory_space<vmem>>, %arg4: memref<64x128xf32, #tpu.memory_space<vmem>>, %arg5: memref<3x64x128xf32, #tpu.memory_space<vmem>>) attributes {dimension_semantics = [#tpu.dimension_semantics<parallel>], iteration_bounds = array<i64: 2>, scalar_prefetch = 0 : i64, scratch_operands = 0 : i64, tpu.core_type = #tpu.core_type<tc>, window_params = [{transform_indices = @transform_0, window_bounds = array<i64: 3, 128, 256>}, {pipeline_mode = #tpu.pipeline_mode<synchronous>, transform_indices = @transform_1, window_bounds = array<i64: 64, 128>}, {pipeline_mode = #tpu.pipeline_mode<synchronous>, transform_indices = @transform_2, window_bounds = array<i64: 64, 1>}, {pipeline_mode = #tpu.pipeline_mode<synchronous>, transform_indices = @transform_3, window_bounds = array<i64: 64, 128>}, {transform_indices = @transform_4, window_bounds = array<i64: 3, 64, 128>}]} {
    %c0_i32 = arith.constant 0 : i32
    %c3_i32 = arith.constant 3 : i32
    %0 = arith.addi %c0_i32, %c3_i32 : i32
    %c1_i32 = arith.constant 1 : i32
    scf.for %arg6 = %c0_i32 to %0 step %c1_i32  : i32 {
      %1 = arith.index_cast %arg6 : i32 to index
      %c0 = arith.constant 0 : index
      %c0_1 = arith.constant 0 : index
      %2 = vector.load %arg1[%1, %c0, %c0_1] : memref<3x128x256xbf16, #tpu.memory_space<vmem>>, vector<1x128x256xbf16>
      %3 = vector.shape_cast %2 : vector<1x128x256xbf16> to vector<128x256xbf16>
      %c0_2 = arith.constant 0 : index
      %c0_3 = arith.constant 0 : index
      %4 = vector.load %arg2[%c0_2, %c0_3] : memref<64x128xbf16, #tpu.memory_space<vmem>>, vector<64x128xbf16>
      %cst = arith.constant dense<0.000000e+00> : vector<64x256xf32>
      %5 = tpu.matmul %4, %3, %cst {dimension_numbers = #tpu.dot_dimension_numbers<[1], [0], [0], [1], [0, 0, 1, 1], [], []>} : vector<64x128xbf16>, vector<128x256xbf16>, vector<64x256xf32> -> vector<64x256xf32>
      %c0_4 = arith.constant 0 : index
      %c0_5 = arith.constant 0 : index
      %6 = vector.load %arg3[%c0_4, %c0_5] : memref<64x1xf32, #tpu.memory_space<vmem>>, vector<64x1xf32>
      %7 = vector.broadcast %6 : vector<64x1xf32> to vector<64x256xf32>
      %8 = arith.addf %5, %7 : vector<64x256xf32>
      %cst_6 = arith.constant dense<0xFF800000> : vector<256xf32>
      %9 = vector.multi_reduction <maximumf>, %8, %cst_6 [0] : vector<64x256xf32> to vector<256xf32>
      %10 = vector.shape_cast %9 : vector<256xf32> to vector<1x256xf32>
      %11 = vector.broadcast %10 : vector<1x256xf32> to vector<64x256xf32>
      %12 = arith.subf %8, %11 : vector<64x256xf32>
      %13 = math.exp %12 : vector<64x256xf32>
      %cst_7 = arith.constant dense<0.000000e+00> : vector<256xf32>
      %14 = vector.multi_reduction <add>, %13, %cst_7 [0] : vector<64x256xf32> to vector<256xf32>
      %15 = vector.shape_cast %14 : vector<256xf32> to vector<1x256xf32>
      %16 = tpu.reciprocal %15 : vector<1x256xf32> -> vector<1x256xf32>
      %17 = vector.broadcast %16 : vector<1x256xf32> to vector<64x256xf32>
      %18 = arith.mulf %13, %17 : vector<64x256xf32>
      %cst_8 = arith.constant dense<0.000000e+00> : vector<64xf32>
      %19 = vector.multi_reduction <add>, %18, %cst_8 [1] : vector<64x256xf32> to vector<64xf32>
      %20 = vector.shape_cast %19 : vector<64xf32> to vector<64x1xf32>
      %21 = arith.truncf %18 : vector<64x256xf32> to vector<64x256xbf16>
      %cst_9 = arith.constant dense<0.000000e+00> : vector<64x128xf32>
      %22 = tpu.matmul %21, %3, %cst_9 {dimension_numbers = #tpu.dot_dimension_numbers<[1], [1], [0], [0], [0, 0, 1, 0], [], []>} : vector<64x256xbf16>, vector<128x256xbf16>, vector<64x128xf32> -> vector<64x128xf32>
      %c0_10 = arith.constant 0 : index
      %c0_11 = arith.constant 0 : index
      %23 = vector.load %arg4[%c0_10, %c0_11] : memref<64x128xf32, #tpu.memory_space<vmem>>, vector<64x128xf32>
      %24 = vector.broadcast %20 : vector<64x1xf32> to vector<64x128xf32>
      %25 = arith.mulf %23, %24 : vector<64x128xf32>
      %26 = arith.subf %22, %25 : vector<64x128xf32>
      %27 = arith.mulf %26, %26 : vector<64x128xf32>
      %cst_12 = arith.constant dense<0.000000e+00> : vector<64xf32>
      %28 = vector.multi_reduction <add>, %27, %cst_12 [1] : vector<64x128xf32> to vector<64xf32>
      %29 = vector.shape_cast %28 : vector<64xf32> to vector<64x1xf32>
      %cst_13 = arith.constant 1.000000e-24 : f32
      %30 = vector.broadcast %cst_13 : f32 to vector<64x1xf32>
      %31 = arith.maximumf %29, %30 : vector<64x1xf32>
      %32 = math.rsqrt %31 : vector<64x1xf32>
      %33 = vector.broadcast %32 : vector<64x1xf32> to vector<64x128xf32>
      %34 = arith.mulf %26, %33 : vector<64x128xf32>
      %35 = arith.mulf %32, %32 : vector<64x1xf32>
      %36 = arith.mulf %29, %35 : vector<64x1xf32>
      %37 = vector.shape_cast %36 : vector<64x1xf32> to vector<1x64x1xf32>
      %cst_14 = arith.constant dense<0.000000e+00> : vector<1xf32>
      %38 = vector.multi_reduction <add>, %37, %cst_14 [1, 2] : vector<1x64x1xf32> to vector<1xf32>
      %39 = vector.shape_cast %38 : vector<1xf32> to vector<1x1x1xf32>
      %40 = vector.extract %39[0, 0, 0] : f32 from vector<1x1x1xf32>
      %cst_15 = arith.constant 1.000000e-24 : f32
      %41 = arith.maximumf %40, %cst_15 : f32
      %42 = math.rsqrt %41 : f32
      %43 = vector.broadcast %42 : f32 to vector<64x128xf32>
      %44 = arith.mulf %34, %43 : vector<64x128xf32>
      %45 = arith.index_cast %arg6 : i32 to index
      %c0_16 = arith.constant 0 : index
      %c0_17 = arith.constant 0 : index
      %46 = vector.load %arg5[%45, %c0_16, %c0_17] : memref<3x64x128xf32, #tpu.memory_space<vmem>>, vector<1x64x128xf32>
      %47 = vector.shape_cast %46 : vector<1x64x128xf32> to vector<64x128xf32>
      %48 = vector.shape_cast %44 : vector<64x128xf32> to vector<1x64x128xf32>
      tpu.vector_store %arg5[%45, %c0_16, %c0_17], %48 {strides = array<i32>} : memref<3x64x128xf32, #tpu.memory_space<vmem>>, vector<1x64x128xf32>,
    }
    %c3_i32_0 = arith.constant 3 : i32
    return
  }
  func.func @transform_0(%arg0: i32) -> (i32, i32, i32) {
    %c0_i32 = arith.constant 0 : i32
    %c0_i32_0 = arith.constant 0 : i32
    %c0_i32_1 = arith.constant 0 : i32
    return %arg0, %c0_i32, %c0_i32_0 : i32, i32, i32
  }
  func.func @transform_1(%arg0: i32) -> (i32, i32) {
    %c0_i32 = arith.constant 0 : i32
    %c0_i32_0 = arith.constant 0 : i32
    %c0_i32_1 = arith.constant 0 : i32
    return %c0_i32, %c0_i32_0 : i32, i32
  }
  func.func @transform_2(%arg0: i32) -> (i32, i32) {
    %c0_i32 = arith.constant 0 : i32
    %c0_i32_0 = arith.constant 0 : i32
    %c0_i32_1 = arith.constant 0 : i32
    return %c0_i32, %c0_i32_0 : i32, i32
  }
  func.func @transform_3(%arg0: i32) -> (i32, i32) {
    %c0_i32 = arith.constant 0 : i32
    %c0_i32_0 = arith.constant 0 : i32
    %c0_i32_1 = arith.constant 0 : i32
    return %c0_i32, %c0_i32_0 : i32, i32
  }
  func.func @transform_4(%arg0: i32) -> (i32, i32, i32) {
    %c0_i32 = arith.constant 0 : i32
    %c0_i32_0 = arith.constant 0 : i32
    %c0_i32_1 = arith.constant 0 : i32
    return %arg0, %c0_i32, %c0_i32_0 : i32, i32, i32
  }
}

</mosaic_0001>

<bundles_post_ra>
// kernel: tpu_custom_call.1
= control target key start
LH: loop header
LB: loop body
LE: loop exit
PB: predicated region body
PF: predicated region fallthrough
CT: control target
= control target key end

     0   :  { %9 = vsyncpa [#allocation3], 0  ;;  %s2011_s0 = inlined_call_operand.hbm [shape: bf16[6,128,256], index: 0, kind: input, shape index: {}]   ;;  %s2012_s1 = inlined_call_operand.hbm [shape: bf16[64,128], index: 1, kind: input, shape index: {}]   ;;  %s2013_s2 = inlined_call_operand.vmem [shape: f32[64,1], index: 2, kind: input, shape index: {}]   ;;  %s2014_s3 = inlined_call_operand.vmem [shape: f32[64,128], index: 3, kind: input, shape index: {}]   ;;  %s2015_s4 = inlined_call_operand.hbm [shape: f32[6,64,128], index: 4, kind: output, shape index: {}]  }
   0x1   :  { %11 = vsyncpa [#allocation3 + $0x1], 0 }
   0x2   :  { %12 = vsyncpa [#allocation6], 0 }
   0x3   :  { %13 = vsyncpa [#allocation4], 0 }
   0x4   :  { %15 = vsyncpa [#allocation4 + $0x1], 0  ;;  %s1490_s15 = smov 0   ;;  %s1492_s16 = smov 0  }
   0x5   :  { %s1494_s17 = smov 0   ;;  %s1496_s18 = smov 0  }
   0x6 LB: > { %s1511_s19 = sadd.s32 4294967295, %s1450_s18   ;;  %s1041_s20 = sadd.s32 4294967294, %s1450_s18   ;;  %s1450_s18 = sphi %s1496_s18, %s2025_s18   ;;  %s1446_s17 = sphi %s1494_s17, %s2024_s17   ;;  %s1442_s16 = sphi %s1492_s16, %s2023_s16   ;;  %s1438_s15 = sphi %s1490_s15, %s2022_s15  }
   0x7   : > { %p41_p0 = scmp.ne.s32.totalorder %s1442_s16, %s1438_s15  ;;  %p42_p1 = scmp.eq.s32.totalorder %s1511_s19, 0 }
   0x8   : > { %p128_p2 = scmp.eq.s32.totalorder %s1511_s19, 1  ;;  %p134_p3 = scmp.eq.s32.totalorder %s1041_s20, 1 }
   0x9   : > { %p1520_p4 = por %p42_p1, %p41_p0  ;;  %p1042_p5 = scmp.ge.s32.totalorder %s1450_s18, 1 }
   0xa   : > { %p1525_p6 = por %p134_p3, %p41_p0  ;;  %p141_p7 = scmp.lt.s32.totalorder %s1450_s18, 3 }
   0xb   : > { %s152_s25 = sshll.u32 %s2012_s1, 4  ;;  %s1456_s27 = smov [#allocation5]   ;;  %s153_s25 = int_to_ptr.hbm [resolvable:$true] %s152_s25 }
   0xc   : > { %p1533_p8 = pnand %p1042_p5, %p141_p7  ;;  %s154_s28 = sshll.u32 %s1456_s27, 4  ;;  %s155_s28 = int_to_ptr.vmem [resolvable:$true] %s154_s28 }
   0xd   : > { %s1543_s29 = sadd.s32 1, %s1450_s18   ;;  %s1457_s30 = smov 64  }
   0xe   : > { %p1194_p9 = pneg %p1533_p8  ;;  %s1458_s5 = smov 4  }
   0xf   : > { %s25_s6 = ssub.s32 %s1450_s18, %s1543_s29  ;;  %s28_s7 = sadd.s32 1, %s1446_s17 }
  0x10   : > { %p1195_p10 = pnand %p1194_p9, %p42_p1  ;;  %p26_p12 = scmp.eq.s32.totalorder %s25_s6, 0 }
  0x11   : > { %p35_p13 = scmp.ne.s32.totalorder %s1446_s17, %s1442_s16  ;;  %p36_p0 = scmp.eq.s32.totalorder %s1450_s18, 0 }
  0x12   : > { %1197 = dma.hbm_to_vmem [thread:$0]  (!%p1195_p10), %s153_s25, 512, %s155_s28, [#allocation6], %s1457_s30, %s1457_s30, %s1458_s5  }
  0x13   : > { %p1207_p3 = scmp.lt.s32.totalorder %s1450_s18, 2  ;;  %p37_p5 = por %p36_p0, %p35_p13 }
  0x14   : > { %s1553_s8 = scalar_select %p26_p12, %s1446_s17, %s28_s7  }
  0x15   : > { %p1557_p7 = por %p128_p2, %p35_p13  ;;  %s174_s10 = sand.u32 1, %s1446_s17  }
  0x16   : > { %s1161_s11 = smul.u32 384, %s1450_s18  ;;  %p1566_p9 = pnand %p1207_p3, %p37_p5 }
  0x17   : > { %s1179_s12 = smul.u32 384, %s174_s10  ;;  %s175_s28 = scalar_lea.sflag [#allocation3], %s174_s10 }
  0x18   : > { %s184_s20 = scalar_lea.hbm %s2011_s0, %s1161_s11  ;;  %p1350_p10 = pneg %p1566_p9 }
  0x19   : > { %s185_s24 = sshll.u32 %s184_s20, 4  ;;  %s178_s25 = scalar_lea.vmem [#allocation2], %s1179_s12  ;;  %s186_s24 = int_to_ptr.hbm [resolvable:$true] %s185_s24 }
  0x1a   : > { %s187_s27 = sshll.u32 %s178_s25, 4  ;;  %s1346_s30 = sshra.s32 %s186_s24, 4  ;;  %s188_s27 = int_to_ptr.vmem [resolvable:$true] %s187_s27  ;;  %s1347_s30 = int_to_ptr.hbm [resolvable:$true] %s1346_s30 }
  0x1b   : > { %s1348_s5 = scalar_lea.hbm %s1347_s30, 384  ;;  %s1353_s11 = scalar_lea.hbm %s2011_s0, 768 }
  0x1c   : > { %p1349_p2 = scmp.ne.s32.totalorder %s1347_s30, %s1348_s5  ;;  %p1354_p0 = scmp.lt.s32.totalorder %s1347_s30, %s2011_s0 }
  0x1d   : > { %p1355_p3 = scmp.lt.s32.totalorder %s1353_s11, %s1348_s5 }
  0x1e   : > { %p1351_p12 = pnand %p1350_p10, %p1349_p2 }
  0x1f   : > { %p1356_p5 = por %p1355_p3, %p1354_p0 }
  0x20   : > { %p1352_p13 = pneg %p1351_p12 }
  0x22   : > { %p1357_p11 = pnand %p1356_p5, %p1352_p13 }
  0x24   : > { %1360 = shalt.err (!%p1357_p11)
}
  0x25   : > { %s1459_s10 = smov 128   ;;  %s1460_s12 = smov 8  }
  0x26   : > { %1201 = dma.hbm_to_vmem [thread:$0]  (!%p1566_p9), %s186_s24, 6144, %s188_s27, %s175_s28, %s1459_s10, %s1459_s10, %s1460_s12  }
  0x27   : > { %199 = sbr.rel (%p1533_p8) target bundleno = 935 (0x3a7), region = 36  ;;  %s1583_s20 = sand.u32 (!%p1533_p8), 1, %s1442_s16  }
  0x28   : > { %s1180_s25 = smul.u32 (!%p1533_p8), 384, %s1583_s20  ;;  %s202_s30 = scalar_lea.sflag (!%p1533_p8), [#allocation3], %s1583_s20 }
  0x2a   : > { %s1587_s5 = scalar_lea.vmem (!%p1533_p8), [#allocation2], %s1180_s25 }
  0x2c   : > { %1425 = dma.done.wait (%p1520_p4), %s202_s30, 6144  }
  0x2d   : > { %1427 = vsyncadd (%p1520_p4), %s202_s30, 4294961152 }
  0x2e   : > { %1429 = dma.done.wait (%p42_p1), [#allocation6], 512  }
  0x2f   : > { %1431 = vsyncadd (%p42_p1), [#allocation6], 4294966784  ;;  %s1181_s26 = smul.u32 192, %s1583_s20  ;;  %s1600_s24 = smov 0  }
  0x31   : > { %s1598_s23 = scalar_lea.vmem [#allocation7], %s1181_s26 }
  0x32 LB: >> { %s1138_s21 = sshll.u32 %s1454_s24, 7  ;;  %v1461_v23 = vmov 0   ;;  %v271_v24 = vld [vmem:[%s2013_s2] sm:$0xff]  ;;  %v272_v37 = vld [vmem:[%s2013_s2 + $0x8] sm:$0xff]  ;;  %v273_v38 = vld [vmem:[%s2013_s2 + $0x10] sm:$0xff]  ;;  %s1131_s30 = sshll.u32 %s1454_s24, 6  ;;  %s1454_s24 = sphi %s1600_s24, %s243_s24  }
  0x33   : >> { %s1607_s27 = scalar_lea.vmem %s1587_s5, %s1138_s21 [#allocation2]  ;;  %1259 = vset.pattern.permute.xlu0 %v1461_v23  ;;  %1260 = vset.pattern.permute.xlu1 %v1461_v23  ;;  %v1155_v52 = vld [vmem:[#allocation5] sm:$0xff]  ;;  %v274_v53 = vld [vmem:[%s2013_s2 + $0x18] sm:$0xff]  ;;  %v1156_v54 = vld [vmem:[#allocation5 + $0x8] sm:$0xff]  ;;  %s1462_s12 = smov 1e-24  }
  0x34   : >> { %v1125_v0 = vld [vmem:[%s1607_s27 + $0x70] sm:$0xf]  ;;  %v1154_v1 = vld [vmem:[%s1607_s27 + $0x74] sm:$0xf0]  ;;  %v1153_v2 = vld [vmem:[%s1607_s27 + $0x74] sm:$0xf]  ;;  %281 = vperm.xlu0 %1259, %v271_v24   ;;  %1261 = vset.pattern.permute.xlu2 %v1461_v23  ;;  %s923_s21 = scalar_lea.vmem %s1598_s23, %s1131_s30 [#allocation7] }
  0x35   : >> { %v1612_v3 = vor.u32 %v1154_v1, %v1125_v0  ;;  %v1127_v4 = vld [vmem:[%s1607_s27 + $0x78] sm:$0xf0]  ;;  %v1117_v5 = vld [vmem:[%s1607_s27 + $0x60] sm:$0xf]  ;;  %v1152_v6 = vld [vmem:[%s1607_s27 + $0x64] sm:$0xf0]  ;;  %291 = vperm.xlu1 %1260, %v273_v38  }
  0x36   : >> { %v1617_v7 = vor.u32 %v1153_v2, %v1127_v4  ;;  %v1151_v8 = vld [vmem:[%s1607_s27 + $0x64] sm:$0xf]  ;;  %v1119_v9 = vld [vmem:[%s1607_s27 + $0x68] sm:$0xf0]  ;;  %v1622_v10 = vor.u32 %v1152_v6, %v1117_v5  ;;  %v1109_v12 = vld [vmem:[%s1607_s27 + $0x50] sm:$0xf] }
  0x37   : >> { %423 = vmatpush.bf16.msra.mxu0 %v1612_v3  ;;  %1163 = vmatpush.bf16.xpose.msra.mxu2 %v1612_v3  ;;  %v1626_v11 = vor.u32 %v1151_v8, %v1119_v9  ;;  %v1150_v13 = vld [vmem:[%s1607_s27 + $0x54] sm:$0xf0]  ;;  %v1149_v14 = vld [vmem:[%s1607_s27 + $0x54] sm:$0xf]  ;;  %v1111_v15 = vld [vmem:[%s1607_s27 + $0x58] sm:$0xf0] }
  0x38   : >> { %452 = vmatpush.bf16.msra.mxu1 %v1617_v7  ;;  %1171 = vmatpush.bf16.xpose.msra.mxu3 %v1617_v7  ;;  %v1634_v16 = vor.u32 %v1150_v13, %v1109_v12  ;;  %v1637_v17 = vor.u32 %v1149_v14, %v1111_v15  ;;  %v1101_v18 = vld [vmem:[%s1607_s27 + $0x40] sm:$0xf]  ;;  %v1148_v19 = vld [vmem:[%s1607_s27 + $0x44] sm:$0xf0]  ;;  %v1147_v20 = vld [vmem:[%s1607_s27 + $0x44] sm:$0xf] }
  0x39   : >> { %v1103_v21 = vld [vmem:[%s1607_s27 + $0x48] sm:$0xf0]  ;;  %v1644_v22 = vor.u32 %v1148_v19, %v1101_v18  ;;  %v1093_v26 = vld [vmem:[%s1607_s27 + $0x30] sm:$0xf]  ;;  %v1146_v27 = vld [vmem:[%s1607_s27 + $0x34] sm:$0xf0] }
  0x3a   : >> { %v1650_v25 = vor.u32 %v1147_v20, %v1103_v21  ;;  %v1145_v28 = vld [vmem:[%s1607_s27 + $0x34] sm:$0xf]  ;;  %v1095_v29 = vld [vmem:[%s1607_s27 + $0x38] sm:$0xf0]  ;;  %v1659_v30 = vor.u32 %v1146_v27, %v1093_v26  ;;  %v1085_v32 = vld [vmem:[%s1607_s27 + $0x20] sm:$0xf] }
  0x3b   : >> { %424 = vmatpush.bf16.msra.mxu0 %v1622_v10  ;;  %v1662_v31 = vor.u32 %v1145_v28, %v1095_v29  ;;  %v1144_v33 = vld [vmem:[%s1607_s27 + $0x24] sm:$0xf0]  ;;  %v1143_v34 = vld [vmem:[%s1607_s27 + $0x24] sm:$0xf]  ;;  %v1087_v35 = vld [vmem:[%s1607_s27 + $0x28] sm:$0xf0] }
  0x3c   : >> { %453 = vmatpush.bf16.msra.mxu1 %v1626_v11  ;;  %v1669_v36 = vor.u32 %v1144_v33, %v1085_v32  ;;  %v1090_v39 = vor.u32 %v1143_v34, %v1087_v35  ;;  %v1077_v40 = vld [vmem:[%s1607_s27 + $0x10] sm:$0xf]  ;;  %v1142_v41 = vld [vmem:[%s1607_s27 + $0x14] sm:$0xf0]  ;;  %286 = vperm.xlu0 %1259, %v272_v37   ;;  %v1141_v42 = vld [vmem:[%s1607_s27 + $0x14] sm:$0xf] }
  0x3d   : >> { %v1079_v43 = vld [vmem:[%s1607_s27 + $0x18] sm:$0xf0]  ;;  %v1078_v44 = vor.u32 %v1142_v41, %v1077_v40  ;;  %v1069_v46 = vld [vmem:[%s1607_s27] sm:$0xf]  ;;  %v1140_v47 = vld [vmem:[%s1607_s27 + $0x4] sm:$0xf0]  ;;  %296 = vperm.xlu1 %1260, %v274_v53  }
  0x3e   : >> { %v1082_v45 = vor.u32 %v1141_v42, %v1079_v43  ;;  %v1139_v48 = vld [vmem:[%s1607_s27 + $0x4] sm:$0xf]  ;;  %v1071_v49 = vld [vmem:[%s1607_s27 + $0x8] sm:$0xf0]  ;;  %v1070_v50 = vor.u32 %v1140_v47, %v1069_v46  ;;  %v278_v55 = vld [vmem:[%s2013_s2 + $0x38] sm:$0xff]  ;;  %s243_s24 = sadd.s32 1, %s1454_s24  }
  0x3f   : >> { %425 = vmatpush.bf16.msra.mxu0 %v1634_v16  ;;  %1164 = vmatpush.bf16.xpose.msra.mxu2 %v1622_v10  ;;  %v1074_v51 = vor.u32 %v1139_v48, %v1071_v49  ;;  %v277_v56 = vld [vmem:[%s2013_s2 + $0x30] sm:$0xff]  ;;  %v275_v57 = vld [vmem:[%s2013_s2 + $0x20] sm:$0xff]  ;;  %v276_v58 = vld [vmem:[%s2013_s2 + $0x28] sm:$0xff]  ;;  %p240_p1 = scmp.ge.s32.totalorder %s243_s24, 3  }
  0x40   : >> { %454 = vmatpush.bf16.msra.mxu1 %v1637_v17  ;;  %1172 = vmatpush.bf16.xpose.msra.mxu3 %v1626_v11  ;;  %v1157_v59 = vld [vmem:[#allocation5 + $0x10] sm:$0xff]  ;;  %v1158_v60 = vld [vmem:[#allocation5 + $0x18] sm:$0xff]  ;;  %s1162_s27 = smul.u32 (%p240_p1), 192, %s1511_s19  ;;  %s946_s28 = sshll.u32 (%p240_p1), %s1598_s23, 4  ;;  %s947_s28 = int_to_ptr.vmem [resolvable:$true] %s946_s28 }
  0x41   : >> { %301 = vperm.xlu2 %1261, %v275_v57   ;;  %s933_s14 = scalar_lea.sflag (%p240_p1), [#allocation4], %s1583_s20  ;;  %s1396_s19 = scalar_lea.hbm (%p240_p1), %s2015_s4, 384 }
  0x42   : > { %s945_s11 = scalar_lea.hbm (%p240_p1), %s2015_s4, %s1162_s27 }
  0x43   : >> { %426 = vmatpush.bf16.msra.mxu0 %v1644_v22  ;;  %s948_s13 = sshll.u32 (%p240_p1), %s945_s11, 4  ;;  %s949_s13 = int_to_ptr.hbm [resolvable:$true] %s948_s13 }
  0x44   : >> { %455 = vmatpush.bf16.msra.mxu1 %v1650_v25  ;;  %311 = vperm.xlu0 %1259, %v277_v56  }
  0x45   : >> { %316 = vperm.xlu1 %1260, %v278_v55  }
  0x47   : >> { %427 = vmatpush.bf16.msra.mxu0 %v1659_v30  ;;  %1165 = vmatpush.bf16.xpose.msra.mxu2 %v1634_v16 }
  0x48   : >> { %456 = vmatpush.bf16.msra.mxu1 %v1662_v31  ;;  %1173 = vmatpush.bf16.xpose.msra.mxu3 %v1637_v17 }
  0x49   : >> { %306 = vperm.xlu2 %1261, %v276_v58  }
  0x4b   : >> { %428 = vmatpush.bf16.msra.mxu0 %v1669_v36 }
  0x4c   : >> { %457 = vmatpush.bf16.msra.mxu1 %v1090_v39 }
  0x4f   : >> { %429 = vmatpush.bf16.msra.mxu0 %v1078_v44  ;;  %1166 = vmatpush.bf16.xpose.msra.mxu2 %v1644_v22 }
  0x50   : >> { %458 = vmatpush.bf16.msra.mxu1 %v1082_v45  ;;  %1174 = vmatpush.bf16.xpose.msra.mxu3 %v1650_v25 }
  0x53   : >> { %430 = vmatpush.bf16.msra.mxu0 %v1070_v50 }
  0x54   : >> { %459 = vmatpush.bf16.msra.mxu1 %v1074_v51 }
  0x56   : >> { %431 = vmatmul.bf16.vlgmr.msra.gmra.mxu0 %v1155_v52 }
  0x57   : >> { %657 = vmatpush.bf16.xpose.msrb.mxu0 %v1612_v3  ;;  %460 = vmatmul.bf16.vlgmr.msra.gmra.mxu1 %v1155_v52 }
  0x58   : >> { %686 = vmatpush.bf16.xpose.msrb.mxu1 %v1617_v7  ;;  %1167 = vmatpush.bf16.xpose.msra.mxu2 %v1659_v30 }
  0x59   : >> { %1175 = vmatpush.bf16.xpose.msra.mxu3 %v1662_v31 }
  0x5f   : >> { %658 = vmatpush.bf16.xpose.msrb.mxu0 %v1622_v10 }
  0x60   : >> { %687 = vmatpush.bf16.xpose.msrb.mxu1 %v1626_v11  ;;  %1168 = vmatpush.bf16.xpose.msra.mxu2 %v1669_v36 }
  0x61   : >> { %1176 = vmatpush.bf16.xpose.msra.mxu3 %v1090_v39 }
  0x66   : >> { %436 = vmatmul.bf16.gmra.mxu0 %v1156_v54 }
  0x67   : >> { %659 = vmatpush.bf16.xpose.msrb.mxu0 %v1634_v16  ;;  %465 = vmatmul.bf16.gmra.mxu1 %v1156_v54 }
  0x68   : >> { %688 = vmatpush.bf16.xpose.msrb.mxu1 %v1637_v17  ;;  %1169 = vmatpush.bf16.xpose.msra.mxu2 %v1078_v44 }
  0x69   : >> { %1177 = vmatpush.bf16.xpose.msra.mxu3 %v1082_v45 }
  0x6f   : >> { %660 = vmatpush.bf16.xpose.msrb.mxu0 %v1644_v22 }
  0x70   : >> { %689 = vmatpush.bf16.xpose.msrb.mxu1 %v1650_v25  ;;  %1170 = vmatpush.bf16.xpose.msra.mxu2 %v1070_v50 }
  0x71   : >> { %1178 = vmatpush.bf16.xpose.msra.mxu3 %v1074_v51 }
  0x76   : >> { %441 = vmatmul.bf16.gmra.mxu0 %v1157_v59 }
  0x77   : >> { %661 = vmatpush.bf16.xpose.msrb.mxu0 %v1659_v30  ;;  %470 = vmatmul.bf16.gmra.mxu1 %v1157_v59 }
  0x78   : >> { %690 = vmatpush.bf16.xpose.msrb.mxu1 %v1662_v31 }
  0x7f   : >> { %662 = vmatpush.bf16.xpose.msrb.mxu0 %v1669_v36 }
  0x80   : >> { %691 = vmatpush.bf16.xpose.msrb.mxu1 %v1090_v39 }
  0x86   : >> { %446 = vmatmul.bf16.gmra.mxu0 %v1158_v60 }
  0x87   : >> { %663 = vmatpush.bf16.xpose.msrb.mxu0 %v1078_v44  ;;  %475 = vmatmul.bf16.gmra.mxu1 %v1158_v60 }
  0x88   : >> { %692 = vmatpush.bf16.xpose.msrb.mxu1 %v1082_v45 }
  0x8f   : >> { %664 = vmatpush.bf16.xpose.msrb.mxu0 %v1070_v50 }
  0x90   : >> { %693 = vmatpush.bf16.xpose.msrb.mxu1 %v1074_v51 }
  0x9b   : >> { %v302_v9 = vpop.permute.xlu2 %301 }
  0xa3   : >> { %v307_v16 = vpop.permute.xlu2 %306 }
  0xa6   : >> { %v282_v7 = vpop.permute.xlu0 %281 }
  0xa7   : >> { %v292_v8 = vpop.permute.xlu1 %291 }
  0xae   : >> { %v287_v12 = vpop.permute.xlu0 %286 }
  0xaf   : >> { %v297_v13 = vpop.permute.xlu1 %296 }
  0xb6   : >> { %v312_v28 = vpop.permute.xlu0 %311 }
  0xb7   : >> { %v317_v35 = vpop.permute.xlu1 %316 }
  0xd3   : >> { %v432_v61 = vpop.f32.mrf.mxu0 }
  0xd4   : >> { %v461_v62 = vpop.f32.mrf.mxu1  ;;  %v433_v21 = vadd.f32 %v432_v61, %v282_v7 }
  0xd5   : >> { %v462_v25 = vadd.f32 %v461_v62, %v282_v7 }
  0xdb   : >> { %v434_v63 = vpop.f32.mrf.mxu0 }
  0xdc   : >> { %v463_v0 = vpop.f32.mrf.mxu1  ;;  %v435_v22 = vadd.f32 %v434_v63, %v287_v12 }
  0xdd   : >> { %v464_v26 = vadd.f32 %v463_v0, %v287_v12 }
  0xe3   : >> { %v437_v1 = vpop.f32.mrf.mxu0 }
  0xe4   : >> { %v466_v2 = vpop.f32.mrf.mxu1  ;;  %v438_v17 = vadd.f32 %v437_v1, %v292_v8 }
  0xe5   : >> { %v1720_v19 = vadd.f32 %v466_v2, %v292_v8 }
  0xe6   : >> { %v481_v30 = vmax.f32 %v433_v21, %v438_v17 }
  0xe7   : >> { %v494_v33 = vmax.f32 %v462_v25, %v1720_v19 }
  0xeb   : >> { %v439_v3 = vpop.f32.mrf.mxu0 }
  0xec   : >> { %v468_v4 = vpop.f32.mrf.mxu1  ;;  %v440_v18 = vadd.f32 %v439_v3, %v297_v13 }
  0xed   : >> { %v1722_v20 = vadd.f32 %v468_v4, %v297_v13 }
  0xee   : >> { %v482_v31 = vmax.f32 %v435_v22, %v440_v18 }
  0xef   : >> { %v495_v34 = vmax.f32 %v464_v26, %v1722_v20 }
  0xf3   : >> { %v442_v5 = vpop.f32.mrf.mxu0 }
  0xf4   : >> { %v471_v6 = vpop.f32.mrf.mxu1  ;;  %v443_v23 = vadd.f32 %v442_v5, %v302_v9 }
  0xf5   : >> { %v1724_v27 = vadd.f32 %v471_v6, %v302_v9 }
  0xf6   : >> { %v483_v38 = vmax.f32 %v481_v30, %v443_v23 }
  0xf7   : >> { %v496_v42 = vmax.f32 %v494_v33, %v1724_v27 }
  0xfb   : >> { %v444_v10 = vpop.f32.mrf.mxu0 }
  0xfc   : >> { %v473_v11 = vpop.f32.mrf.mxu1  ;;  %v445_v24 = vadd.f32 %v444_v10, %v307_v16 }
  0xfd   : >> { %v1726_v29 = vadd.f32 %v473_v11, %v307_v16 }
  0xfe   : >> { %v484_v39 = vmax.f32 %v482_v31, %v445_v24 }
  0xff   : >> { %v497_v43 = vmax.f32 %v495_v34, %v1726_v29 }
 0x103   : >> { %v447_v14 = vpop.f32.mrf.mxu0 }
 0x104   : >> { %v476_v15 = vpop.f32.mrf.mxu1  ;;  %v448_v32 = vadd.f32 %v447_v14, %v312_v28 }
 0x105   : >> { %v1730_v36 = vadd.f32 %v476_v15, %v312_v28 }
 0x106   : >> { %v485_v45 = vmax.f32 %v483_v38, %v448_v32 }
 0x107   : >> { %v498_v47 = vmax.f32 %v496_v42, %v1730_v36 }
 0x10b   : >> { %v449_v37 = vpop.f32.mrf.mxu0 }
 0x10c   : >> { %v450_v40 = vadd.f32 %v449_v37, %v317_v35  ;;  %v478_v41 = vpop.f32.mrf.mxu1 }
 0x10d   : >> { %v1734_v44 = vadd.f32 %v478_v41, %v317_v35 }
 0x10e   : >> { %v486_v46 = vmax.f32 %v484_v39, %v450_v40 }
 0x10f   : >> { %v499_v48 = vmax.f32 %v497_v43, %v1734_v44 }
 0x110   : >> { %v487_v49 = vmax.f32 %v485_v45, %v486_v46 }
 0x111   : >> { %v500_v50 = vmax.f32 %v498_v47, %v499_v48 }
 0x112   : >> { %v488_v51 = vrot.slane %v487_v49, 4 }
 0x113   : >> { %v501_v52 = vrot.slane %v500_v50, 4 }
 0x114   : >> { %v489_v53 = vmax.f32 %v487_v49, %v488_v51 }
 0x115   : >> { %v502_v54 = vmax.f32 %v500_v50, %v501_v52 }
 0x116   : >> { %v490_v55 = vrot.slane %v489_v53, 2 }
 0x117   : >> { %v503_v56 = vrot.slane %v502_v54, 2 }
 0x118   : >> { %v491_v57 = vmax.f32 %v489_v53, %v490_v55 }
 0x119   : >> { %v504_v58 = vmax.f32 %v502_v54, %v503_v56 }
 0x11a   : >> { %v492_v59 = vrot.slane %v491_v57, 1 }
 0x11b   : >> { %v505_v60 = vrot.slane %v504_v58, 1 }
 0x11c   : >> { %v493_v61 = vmax.f32 %v491_v57, %v492_v59 }
 0x11d   : >> { %v506_v1 = vmax.f32 %v504_v58, %v505_v60 }
 0x11e   : >> { %v507_v62 = vsub.f32 %v433_v21, %v493_v61  ;;  %v509_v63 = vsub.f32 %v435_v22, %v493_v61  ;;  %v511_v0 = vsub.f32 %v438_v17, %v493_v61  ;;  %v513_v2 = vsub.f32 %v440_v18, %v493_v61 }
 0x11f   : >> { %v515_v3 = vsub.f32 %v443_v23, %v493_v61  ;;  %v517_v6 = vsub.f32 %v445_v24, %v493_v61  ;;  %v508_v8 = vsub.f32 %v462_v25, %v506_v1  ;;  %v510_v10 = vsub.f32 %v464_v26, %v506_v1 }
 0x120   : >> { %v523_v4 = vmul.f32 1.442695, %v507_v62  ;;  %v527_v5 = vmul.f32 1.442695, %v509_v63  ;;  %v531_v7 = vmul.f32 1.442695, %v511_v0  ;;  %v519_v11 = vsub.f32 %v448_v32, %v493_v61 }
 0x121   : >> { %v535_v9 = vmul.f32 1.442695, %v513_v2  ;;  %v539_v12 = vmul.f32 1.442695, %v515_v3  ;;  %v543_v13 = vmul.f32 1.442695, %v517_v6  ;;  %v512_v14 = vsub.f32 %v1720_v19, %v506_v1 }
 0x122   : >> { %1262 = vpow2.f32 %v523_v4  ;;  %v521_v15 = vsub.f32 %v450_v40, %v493_v61  ;;  %v525_v16 = vmul.f32 1.442695, %v508_v8  ;;  %v514_v17 = vsub.f32 %v1722_v20, %v506_v1 }
 0x123   : >> { %1264 = vpow2.f32 %v527_v5  ;;  %v529_v18 = vmul.f32 1.442695, %v510_v10  ;;  %v547_v22 = vmul.f32 1.442695, %v519_v11  ;;  %v516_v24 = vsub.f32 %v1724_v27, %v506_v1 }
 0x124   : >> { %1266 = vpow2.f32 %v531_v7  ;;  %v533_v25 = vmul.f32 1.442695, %v512_v14  ;;  %v551_v26 = vmul.f32 1.442695, %v521_v15  ;;  %v518_v20 = vsub.f32 %v1726_v29, %v506_v1 }
 0x125   : >> { %1268 = vpow2.f32 %v535_v9  ;;  %v537_v30 = vmul.f32 1.442695, %v514_v17  ;;  %v520_v33 = vsub.f32 %v1730_v36, %v506_v1  ;;  %v541_v27 = vmul.f32 1.442695, %v516_v24 }
 0x126   : >> { %1270 = vpow2.f32 %v539_v12  ;;  %v522_v29 = vsub.f32 %v1734_v44, %v506_v1  ;;  %v545_v38 = vmul.f32 1.442695, %v518_v20 }
 0x127   : >> { %1272 = vpow2.f32 %v543_v13  ;;  %v549_v36 = vmul.f32 1.442695, %v520_v33 }
 0x128   : >> { %v1740_v21 = vpop.eup %1262  ;;  %1274 = vpow2.f32 %v525_v16  ;;  %v553_v44 = vmul.f32 1.442695, %v522_v29 }
 0x129   : >> { %v1742_v23 = vpop.eup %1264  ;;  %1276 = vpow2.f32 %v529_v18 }
 0x12a   : >> { %v555_v19 = vadd.f32 %v1742_v23, %v1740_v21  ;;  %v1747_v28 = vpop.eup %1266  ;;  %1278 = vpow2.f32 %v547_v22 }
 0x12b   : >> { %v1751_v32 = vpop.eup %1268  ;;  %1280 = vpow2.f32 %v533_v25 }
 0x12c   : >> { %v556_v31 = vadd.f32 %v1747_v28, %v555_v19  ;;  %v1754_v34 = vpop.eup %1270  ;;  %1282 = vpow2.f32 %v551_v26 }
 0x12d   : >> { %v1757_v37 = vpop.eup %1272  ;;  %1284 = vpow2.f32 %v537_v30 }
 0x12e   : >> { %v557_v35 = vadd.f32 %v1751_v32, %v556_v31  ;;  %v1760_v39 = vpop.eup %1274  ;;  %1286 = vpow2.f32 %v541_v27 }
 0x12f   : >> { %v1763_v41 = vpop.eup %1276  ;;  %1288 = vpow2.f32 %v545_v38 }
 0x130   : >> { %v558_v40 = vadd.f32 %v1754_v34, %v557_v35  ;;  %v1765_v42 = vpop.eup %1278  ;;  %v568_v45 = vadd.f32 %v1763_v41, %v1760_v39  ;;  %1290 = vpow2.f32 %v549_v36 }
 0x131   : >> { %v1770_v46 = vpop.eup %1280  ;;  %1292 = vpow2.f32 %v553_v44 }
 0x132   : >> { %v559_v43 = vadd.f32 %v1757_v37, %v558_v40  ;;  %v1772_v47 = vpop.eup %1282  ;;  %v569_v49 = vadd.f32 %v1770_v46, %v568_v45 }
 0x133   : >> { %v1776_v50 = vpop.eup %1284 }
 0x134   : >> { %v560_v48 = vadd.f32 %v1765_v42, %v559_v43  ;;  %v570_v52 = vadd.f32 %v1776_v50, %v569_v49  ;;  %v1780_v53 = vpop.eup %1286 }
 0x135   : >> { %v1783_v56 = vpop.eup %1288 }
 0x136   : >> { %v561_v51 = vadd.f32 %v1772_v47, %v560_v48  ;;  %v571_v55 = vadd.f32 %v1780_v53, %v570_v52  ;;  %v1786_v59 = vpop.eup %1290 }
 0x137   : >> { %v1789_v62 = vpop.eup %1292 }
 0x138   : >> { %v562_v54 = vrot.slane %v561_v51, 4  ;;  %v572_v58 = vadd.f32 %v1783_v56, %v571_v55 }
 0x13a   : >> { %v563_v57 = vadd.f32 %v562_v54, %v561_v51  ;;  %v573_v61 = vadd.f32 %v1786_v59, %v572_v58 }
 0x13c   : >> { %v564_v60 = vrot.slane %v563_v57, 2  ;;  %v574_v0 = vadd.f32 %v1789_v62, %v573_v61 }
 0x13e   : >> { %v565_v63 = vadd.f32 %v564_v60, %v563_v57  ;;  %v575_v2 = vrot.slane %v574_v0, 4 }
 0x140   : >> { %v566_v1 = vrot.slane %v565_v63, 1  ;;  %v576_v4 = vadd.f32 %v575_v2, %v574_v0 }
 0x142   : >> { %v567_v3 = vadd.f32 %v566_v1, %v565_v63  ;;  %v577_v5 = vrot.slane %v576_v4, 2  ;;  %v715_v1 = vld [vmem:[%s2014_s3] sm:$0xff] }
 0x144   : >> { %1294 = vrcp.f32 %v567_v3  ;;  %v578_v6 = vadd.f32 %v577_v5, %v576_v4  ;;  %v592_v12 = vand.u32 2147483648, %v567_v3  ;;  %v590_v14 = vand.u32 2147483647, %v567_v3 }
 0x145   : >> { %vm586_vm1 = vweird.f32 %v567_v3 }
 0x146   : >> { %v579_v7 = vrot.slane %v578_v6, 1  ;;  %v593_v17 = vor.u32 1.1754944e-38, %v592_v12  ;;  %vm591_vm3 = vcmp.eq.f32.partialorder %v590_v14, 8.507059e+37 }
 0x148   : >> { %v580_v9 = vadd.f32 %v579_v7, %v578_v6 }
 0x14a   : >> { %v1295_v8 = vpop.eup %1294  ;;  %1296 = vrcp.f32 %v580_v9  ;;  %v606_v31 = vand.u32 2147483648, %v580_v9  ;;  %v604_v35 = vand.u32 2147483647, %v580_v9  ;;  %vm600_vm5 = vweird.f32 %v580_v9 }
 0x14b   : >> { %v582_v10 = vmul.f32 %v1295_v8, %v567_v3  ;;  %vm587_vm0 = vweird.f32 %v1295_v8 }
 0x14c   : >> { %vm588_vm2 = vmor %vm586_vm1, %vm587_vm0  ;;  %v607_v40 = vor.u32 1.1754944e-38, %v606_v31  ;;  %vm605_vm7 = vcmp.eq.f32.partialorder %v604_v35, 8.507059e+37 }
 0x14d   : >> { %v583_v11 = vsub.f32 1.0, %v582_v10 }
 0x14f   : >> { %v584_v13 = vmul.f32 %v1295_v8, %v583_v11  ;;  %v716_v11 = vld [vmem:[%s2014_s3 + $0x8] sm:$0xff] }
 0x150   : >> { %v1297_v16 = vpop.eup %1296 }
 0x151   : >> { %v585_v15 = vadd.f32 %v1295_v8, %v584_v13  ;;  %v596_v18 = vmul.f32 %v1297_v16, %v580_v9  ;;  %vm601_vm4 = vweird.f32 %v1297_v16 }
 0x152   : >> { %vm602_vm6 = vmor %vm600_vm5, %vm601_vm4 }
 0x153   : >> { %v589_v22 = vsel %vm588_vm2, %v1295_v8, %v585_v15  ;;  %v597_v25 = vsub.f32 1.0, %v596_v18 }
 0x154   : >> { %v594_v24 = vsel %vm591_vm3, %v593_v17, %v589_v22 }
 0x155   : >> { %v609_v26 = vmul.f32 %v1740_v21, %v594_v24  ;;  %v611_v19 = vmul.f32 %v1742_v23, %v594_v24  ;;  %v613_v20 = vmul.f32 %v1747_v28, %v594_v24  ;;  %v615_v30 = vmul.f32 %v1751_v32, %v594_v24 }
 0x156   : >> { %v598_v27 = vmul.f32 %v1297_v16, %v597_v25  ;;  %v621_v52 = vmul.f32 %v1765_v42, %v594_v24  ;;  %v718_v25 = vld [vmem:[%s2014_s3 + $0x18] sm:$0xff] }
 0x157   : >> { %v649_v33 = vpack.c.bf16 %v611_v19, %v609_v26  ;;  %v651_v29 = vpack.c.bf16 %v615_v30, %v613_v20 }
 0x158   : >> { %v599_v38 = vadd.f32 %v1297_v16, %v598_v27 }
 0x159   : >> { %665 = vmatmul.bf16.vlgmr.msrb.gmra.mxu0 %v649_v33  ;;  %670 = vmatmul.bf16.vlgmr.msra.gmra.mxu2 %v651_v29  ;;  %v719_v29 = vld [vmem:[%s2014_s3 + $0x20] sm:$0xff] }
 0x15a   : >> { %v603_v36 = vsel %vm602_vm6, %v1297_v16, %v599_v38 }
 0x15b   : >> { %v608_v21 = vsel %vm605_vm7, %v607_v40, %v603_v36 }
 0x15c   : >> { %v614_v23 = vmul.f32 %v1770_v46, %v608_v21  ;;  %v616_v28 = vmul.f32 %v1776_v50, %v608_v21  ;;  %v612_v32 = vmul.f32 %v1763_v41, %v608_v21  ;;  %v610_v43 = vmul.f32 %v1760_v39, %v608_v21 }
 0x15d   : >> { %v622_v46 = vmul.f32 %v1786_v59, %v608_v21  ;;  %v619_v50 = vmul.f32 %v1757_v37, %v594_v24  ;;  %v620_v41 = vmul.f32 %v1783_v56, %v608_v21  ;;  %v617_v39 = vmul.f32 %v1754_v34, %v594_v24 }
 0x15e   : >> { %v652_v45 = vpack.c.bf16 %v616_v28, %v614_v23  ;;  %v631_v44 = vadd.f32 %v614_v23, %v613_v20  ;;  %v628_v48 = vadd.f32 %v612_v32, %v611_v19  ;;  %v650_v49 = vpack.c.bf16 %v612_v32, %v610_v43 }
 0x15f   : >> { %v625_v51 = vadd.f32 %v610_v43, %v609_v26  ;;  %v643_v54 = vadd.f32 %v622_v46, %v621_v52  ;;  %v640_v55 = vadd.f32 %v620_v41, %v619_v50  ;;  %v653_v57 = vpack.c.bf16 %v619_v50, %v617_v39  ;;  %v720_v43 = vld [vmem:[%s2014_s3 + $0x28] sm:$0xff]  ;;  %v721_v50 = vld [vmem:[%s2014_s3 + $0x30] sm:$0xff] }
 0x160   : >> { %699 = vmatmul.bf16.vlgmr.msra.gmra.mxu3 %v652_v45  ;;  %632 = vadd.xlane.f32.xlu1 %v631_v44  ;;  %v634_v58 = vadd.f32 %v616_v28, %v615_v30  ;;  %v618_v60 = vmul.f32 %v1780_v53, %v608_v21  ;;  %v623_v37 = vmul.f32 %v1772_v47, %v594_v24  ;;  %v717_v47 = vld [vmem:[%s2014_s3 + $0x10] sm:$0xff] }
 0x161   : >> { %629 = vadd.xlane.f32.xlu0 %v628_v48  ;;  %694 = vmatmul.bf16.vlgmr.msrb.gmra.mxu1 %v650_v49  ;;  %v624_v56 = vmul.f32 %v1789_v62, %v608_v21 }
 0x162   : >> { %626 = vadd.xlane.f32.xlu2 %v625_v51  ;;  %v654_v61 = vpack.c.bf16 %v620_v41, %v618_v60  ;;  %v637_v42 = vadd.f32 %v618_v60, %v617_v39  ;;  %v655_v59 = vpack.c.bf16 %v623_v37, %v621_v52  ;;  %v722_v60 = vld [vmem:[%s2014_s3 + $0x38] sm:$0xff] }
 0x163   : >> { %v646_v34 = vadd.f32 %v624_v56, %v623_v37  ;;  %v656_v63 = vpack.c.bf16 %v624_v56, %v622_v46 }
 0x168   : >> { %644 = vadd.xlane.f32.xlu1 %v643_v54 }
 0x169   : >> { %641 = vadd.xlane.f32.xlu0 %v640_v55  ;;  %675 = vmatmul.bf16.gmra.mxu2 %v653_v57 }
 0x16a   : >> { %635 = vadd.xlane.f32.xlu2 %v634_v58 }
 0x170   : >> { %704 = vmatmul.bf16.gmra.mxu3 %v654_v61 }
 0x172   : >> { %638 = vadd.xlane.f32.xlu2 %v637_v42 }
 0x179   : >> { %680 = vmatmul.bf16.gmra.mxu2 %v655_v59 }
 0x17a   : >> { %647 = vadd.xlane.f32.xlu2 %v646_v34 }
 0x180   : >> { %709 = vmatmul.bf16.gmra.mxu3 %v656_v63 }
 0x1d3   : >> { %v633_v62 = vpop.xlane.xlu1 %632 }
 0x1d4   : >> { %v630_v7 = vpop.xlane.xlu0 %629  ;;  %v725_v10 = vmul.f32 %v717_v47, %v633_v62 }
 0x1d5   : >> { %v627_v53 = vpop.xlane.xlu2 %626  ;;  %v724_v17 = vmul.f32 %v716_v11, %v630_v7 }
 0x1d6   : >> { %v666_v0 = vpop.f32.mrf.mxu0  ;;  %v723_v4 = vmul.f32 %v715_v1, %v627_v53 }
 0x1db   : >> { %v645_v41 = vpop.xlane.xlu1 %644 }
 0x1dc   : >> { %v671_v2 = vpop.f32.mrf.mxu2  ;;  %v642_v45 = vpop.xlane.xlu0 %641  ;;  %v729_v54 = vmul.f32 %v721_v50, %v645_v41 }
 0x1dd   : >> { %v636_v18 = vpop.xlane.xlu2 %635  ;;  %v728_v48 = vmul.f32 %v720_v43, %v642_v45 }
 0x1de   : >> { %v695_v3 = vpop.f32.mrf.mxu1  ;;  %v668_v13 = vpop.f32.mrf.mxu0  ;;  %v726_v30 = vmul.f32 %v718_v25, %v636_v18 }
 0x1df   : >> { %v696_v5 = vadd.f32 %v695_v3, %v666_v0 }
 0x1e1   : >> { %v1814_v6 = vsub.f32 %v696_v5, %v723_v4 }
 0x1e3   : >> { %v700_v8 = vpop.f32.mrf.mxu3  ;;  %v739_v9 = vmul.f32 %v1814_v6, %v1814_v6 }
 0x1e4   : >> { %v701_v12 = vadd.f32 %v700_v8, %v671_v2  ;;  %v673_v14 = vpop.f32.mrf.mxu2 }
 0x1e5   : >> { %747 = vadd.xlane.f32.xlu0 %v739_v9  ;;  %v639_v38 = vpop.xlane.xlu2 %638 }
 0x1e6   : >> { %v1821_v15 = vsub.f32 %v701_v12, %v725_v10  ;;  %v697_v16 = vpop.f32.mrf.mxu1  ;;  %v727_v36 = vmul.f32 %v719_v29, %v639_v38 }
 0x1e7   : >> { %v698_v22 = vadd.f32 %v697_v16, %v668_v13 }
 0x1e8   : >> { %v741_v24 = vmul.f32 %v1821_v15, %v1821_v15 }
 0x1e9   : >> { %v1828_v26 = vsub.f32 %v698_v22, %v724_v17 }
 0x1ea   : >> { %751 = vadd.xlane.f32.xlu2 %v741_v24 }
 0x1eb   : >> { %v702_v19 = vpop.f32.mrf.mxu3  ;;  %v740_v20 = vmul.f32 %v1828_v26, %v1828_v26 }
 0x1ec   : >> { %v703_v31 = vadd.f32 %v702_v19, %v673_v14  ;;  %v676_v33 = vpop.f32.mrf.mxu2 }
 0x1ed   : >> { %749 = vadd.xlane.f32.xlu1 %v740_v20  ;;  %v648_v61 = vpop.xlane.xlu2 %647 }
 0x1ee   : >> { %v1832_v27 = vsub.f32 %v703_v31, %v726_v30  ;;  %v730_v56 = vmul.f32 %v722_v60, %v648_v61 }
 0x1f0   : >> { %v742_v35 = vmul.f32 %v1832_v27, %v1832_v27 }
 0x1f2   : >> { %753 = vadd.xlane.f32.xlu0 %v742_v35 }
 0x1f3   : >> { %v705_v40 = vpop.f32.mrf.mxu3 }
 0x1f4   : >> { %v706_v21 = vadd.f32 %v705_v40, %v676_v33  ;;  %v678_v23 = vpop.f32.mrf.mxu2 }
 0x1f6   : >> { %v1839_v28 = vsub.f32 %v706_v21, %v727_v36 }
 0x1f8   : >> { %v743_v32 = vmul.f32 %v1839_v28, %v1839_v28 }
 0x1fa   : >> { %755 = vadd.xlane.f32.xlu1 %v743_v32 }
 0x1fb   : >> { %v707_v44 = vpop.f32.mrf.mxu3 }
 0x1fc   : >> { %v708_v49 = vadd.f32 %v707_v44, %v678_v23  ;;  %v681_v52 = vpop.f32.mrf.mxu2 }
 0x1fe   : >> { %v1846_v51 = vsub.f32 %v708_v49, %v728_v48 }
 0x200   : >> { %v744_v46 = vmul.f32 %v1846_v51, %v1846_v51 }
 0x202   : >> { %757 = vadd.xlane.f32.xlu2 %v744_v46 }
 0x203   : >> { %v710_v39 = vpop.f32.mrf.mxu3 }
 0x204   : >> { %v711_v55 = vadd.f32 %v710_v39, %v681_v52  ;;  %v683_v42 = vpop.f32.mrf.mxu2 }
 0x206   : >> { %v1853_v57 = vsub.f32 %v711_v55, %v729_v54 }
 0x208   : >> { %v745_v58 = vmul.f32 %v1853_v57, %v1853_v57 }
 0x20a   : >> { %759 = vadd.xlane.f32.xlu0 %v745_v58 }
 0x20b   : >> { %v712_v37 = vpop.f32.mrf.mxu3 }
 0x20c   : >> { %v713_v59 = vadd.f32 %v712_v37, %v683_v42 }
 0x20e   : >> { %v1860_v34 = vsub.f32 %v713_v59, %v730_v56 }
 0x210   : >> { %v746_v63 = vmul.f32 %v1860_v34, %v1860_v34 }
 0x212   : >> { %761 = vadd.xlane.f32.xlu1 %v746_v63 }
 0x258   : >> { %v1864_v0 = vpop.xlane.xlu0 %747 }
 0x259   : >> { %v763_v2 = vmax.f32 %v1864_v0, 1e-24 }
 0x25b   : >> { %vm777_vm12 = vweird.f32 %v763_v2 }
 0x25d   : >> { %v1870_v3 = vpop.xlane.xlu2 %751 }
 0x25e   : >> { %v1875_v5 = vmax.f32 %v1870_v3, 1e-24 }
 0x260   : >> { %v1866_v1 = vpop.xlane.xlu1 %749  ;;  %vm797_vm0 = vweird.f32 %v1875_v5 }
 0x261   : >> { %v764_v53 = vmax.f32 %v1866_v1, 1e-24 }
 0x263   : >> { %1298 = vrsqrt.f32 %v764_v53  ;;  %vm787_vm10 = vweird.f32 %v764_v53 }
 0x264   : >> { %1300 = vrsqrt.f32 %v763_v2 }
 0x265   : >> { %v1872_v4 = vpop.xlane.xlu0 %753  ;;  %1302 = vrsqrt.f32 %v1875_v5 }
 0x266   : >> { %v1878_v47 = vmax.f32 %v1872_v4, 1e-24 }
 0x268   : >> { %1304 = vrsqrt.f32 %v1878_v47  ;;  %vm807_vm2 = vweird.f32 %v1878_v47 }
 0x269   : >> { %v1299_v62 = vpop.eup %1298 }
 0x26a   : >> { %v1301_v8 = vpop.eup %1300  ;;  %v782_v10 = vmul.f32 %v1299_v62, %v764_v53  ;;  %vm788_vm8 = vweird.f32 %v1299_v62 }
 0x26b   : >> { %v1303_v11 = vpop.eup %1302  ;;  %v772_v12 = vmul.f32 %v1301_v8, %v763_v2  ;;  %vm778_vm9 = vweird.f32 %v1301_v8  ;;  %vm789_vm11 = vmor %vm787_vm10, %vm788_vm8  ;;  %vm875_vm10 = vcmask 7168  }
 0x26c   : >> { %v783_v14 = vmul.f32 %v1299_v62, %v782_v10  ;;  %v792_v16 = vmul.f32 %v1303_v11, %v1875_v5  ;;  %vm779_vm13 = vmor %vm777_vm12, %vm778_vm9  ;;  %vm798_vm14 = vweird.f32 %v1303_v11 }
 0x26d   : >> { %v1882_v7 = vpop.xlane.xlu1 %755  ;;  %v773_v17 = vmul.f32 %v1301_v8, %v772_v12  ;;  %vm799_vm1 = vmor %vm797_vm0, %vm798_vm14 }
 0x26e   : >> { %v1885_v9 = vmax.f32 %v1882_v7, 1e-24  ;;  %v1305_v13 = vpop.eup %1304  ;;  %v784_v19 = vmul.f32 0.5, %v783_v14  ;;  %v793_v30 = vmul.f32 %v1303_v11, %v792_v16 }
 0x26f   : >> { %v802_v18 = vmul.f32 %v1305_v13, %v1878_v47  ;;  %v774_v31 = vmul.f32 0.5, %v773_v17  ;;  %vm808_vm15 = vweird.f32 %v1305_v13 }
 0x270   : >> { %1306 = vrsqrt.f32 %v1885_v9  ;;  %v785_v35 = vsub.f32 1.5, %v784_v19  ;;  %v794_v38 = vmul.f32 0.5, %v793_v30  ;;  %vm809_vm4 = vmor %vm807_vm2, %vm808_vm15  ;;  %vm817_vm5 = vweird.f32 %v1885_v9 }
 0x271   : >> { %v803_v33 = vmul.f32 %v1305_v13, %v802_v18  ;;  %v775_v40 = vsub.f32 1.5, %v774_v31 }
 0x272   : >> { %v786_v43 = vmul.f32 %v1299_v62, %v785_v35  ;;  %v795_v48 = vsub.f32 1.5, %v794_v38 }
 0x273   : >> { %v804_v36 = vmul.f32 0.5, %v803_v33  ;;  %v776_v49 = vmul.f32 %v1301_v8, %v775_v40 }
 0x274   : >> { %v1904_v50 = vsel %vm789_vm11, %v1299_v62, %v786_v43  ;;  %v796_v54 = vmul.f32 %v1303_v11, %v795_v48 }
 0x275   : >> { %v1890_v22 = vpop.xlane.xlu2 %757  ;;  %v805_v52 = vsub.f32 1.5, %v804_v36  ;;  %v1906_v55 = vsel %vm779_vm13, %v1301_v8, %v776_v49  ;;  %v860_v37 = vmul.f32 %v1904_v50, %v1904_v50 }
 0x276   : >> { %v1307_v24 = vpop.eup %1306  ;;  %v1893_v25 = vmax.f32 %v1890_v22, 1e-24  ;;  %v859_v53 = vmul.f32 %v1906_v55, %v1906_v55  ;;  %v1918_v2 = vsel %vm799_vm1, %v1303_v11, %v796_v54 }
 0x277   : >> { %v812_v20 = vmul.f32 %v1307_v24, %v1885_v9  ;;  %v806_v58 = vmul.f32 %v1305_v13, %v805_v52  ;;  %vm818_vm3 = vweird.f32 %v1307_v24  ;;  %v868_v47 = vmul.f32 %v860_v37, %v1866_v1 }
 0x278   : >> { %1308 = vrsqrt.f32 %v1893_v25  ;;  %vm819_vm7 = vmor %vm817_vm5, %vm818_vm3  ;;  %vm827_vm8 = vweird.f32 %v1893_v25  ;;  %v867_v11 = vmul.f32 %v859_v53, %v1864_v0  ;;  %v861_v14 = vmul.f32 %v1918_v2, %v1918_v2 }
 0x279   : >> { %v813_v29 = vmul.f32 %v1307_v24, %v812_v20  ;;  %v1921_v5 = vsel %vm809_vm4, %v1305_v13, %v806_v58  ;;  %v877_v17 = vsel %vm875_vm10, %v868_v47, 0.0 }
 0x27a   : >> { %v862_v9 = vmul.f32 %v1921_v5, %v1921_v5  ;;  %v869_v19 = vmul.f32 %v861_v14, %v1870_v3 }
 0x27b   : >> { %v814_v45 = vmul.f32 0.5, %v813_v29 }
 0x27c   : >> { %v870_v20 = vmul.f32 %v862_v9, %v1872_v4  ;;  %v879_v36 = vsel %vm875_vm10, %v869_v19, 0.0 }
 0x27d   : >> { %v1897_v21 = vpop.xlane.xlu0 %759  ;;  %v815_v41 = vsub.f32 1.5, %v814_v45 }
 0x27e   : >> { %v1309_v23 = vpop.eup %1308  ;;  %v1900_v32 = vmax.f32 %v1897_v21, 1e-24  ;;  %v881_v3 = vsel %vm875_vm10, %v870_v20, 0.0 }
 0x27f   : >> { %v822_v44 = vmul.f32 %v1309_v23, %v1893_v25  ;;  %v816_v59 = vmul.f32 %v1307_v24, %v815_v41  ;;  %vm828_vm6 = vweird.f32 %v1309_v23  ;;  %v876_v25 = vsel %vm875_vm10, %v867_v11, 0.0 }
 0x280   : >> { %1310 = vrsqrt.f32 %v1900_v32  ;;  %vm829_vm9 = vmor %vm827_vm8, %vm828_vm6  ;;  %vm837_vm12 = vweird.f32 %v1900_v32  ;;  %v878_v31 = vadd.f32 %v877_v17, %v876_v25  ;;  %v852_v17 = vmul.f32 %v1904_v50, %v1828_v26 }
 0x281   : >> { %v823_v46 = vmul.f32 %v1309_v23, %v822_v44  ;;  %v1924_v10 = vsel %vm819_vm7, %v1307_v24, %v816_v59 }
 0x282   : >> { %v863_v18 = vmul.f32 %v1924_v10, %v1924_v10 }
 0x283   : >> { %v824_v39 = vmul.f32 0.5, %v823_v46 }
 0x284   : >> { %v871_v29 = vmul.f32 %v863_v18, %v1882_v7  ;;  %v854_v18 = vmul.f32 %v1921_v5, %v1832_v27 }
 0x285   : >> { %v825_v60 = vsub.f32 1.5, %v824_v39  ;;  %v1908_v61 = vpop.xlane.xlu1 %761 }
 0x286   : >> { %v1311_v42 = vpop.eup %1310  ;;  %v770_v56 = vmax.f32 %v1908_v61, 1e-24  ;;  %v883_v43 = vsel %vm875_vm10, %v871_v29, 0.0 }
 0x287   : >> { %v832_v63 = vmul.f32 %v1311_v42, %v1900_v32  ;;  %v826_v62 = vmul.f32 %v1309_v23, %v825_v60  ;;  %vm838_vm11 = vweird.f32 %v1311_v42 }
 0x288   : >> { %1312 = vrsqrt.f32 %v770_v56  ;;  %vm839_vm13 = vmor %vm837_vm12, %vm838_vm11  ;;  %vm847_vm15 = vweird.f32 %v770_v56 }
 0x289   : >> { %v833_v8 = vmul.f32 %v1311_v42, %v832_v63  ;;  %v1932_v13 = vsel %vm829_vm9, %v1309_v23, %v826_v62  ;;  %v880_v23 = vadd.f32 %v879_v36, %v878_v31 }
 0x28a   : >> { %v864_v30 = vmul.f32 %v1932_v13, %v1932_v13 }
 0x28b   : >> { %v834_v12 = vmul.f32 0.5, %v833_v8  ;;  %v882_v44 = vadd.f32 %v881_v3, %v880_v23 }
 0x28c   : >> { %v872_v4 = vmul.f32 %v864_v30, %v1890_v22 }
 0x28d   : >> { %v835_v16 = vsub.f32 1.5, %v834_v12  ;;  %v884_v49 = vadd.f32 %v883_v43, %v882_v44 }
 0x28e   : >> { %v1313_v1 = vpop.eup %1312  ;;  %v885_v7 = vsel %vm875_vm10, %v872_v4, 0.0 }
 0x28f   : >> { %v836_v24 = vmul.f32 %v1311_v42, %v835_v16  ;;  %v842_v0 = vmul.f32 %v1313_v1, %v770_v56  ;;  %vm848_vm14 = vweird.f32 %v1313_v1  ;;  %v886_v39 = vadd.f32 %v885_v7, %v884_v49 }
 0x290   : >> { %vm849_vm0 = vmor %vm847_vm15, %vm848_vm14  ;;  %v851_v16 = vmul.f32 %v1906_v55, %v1814_v6  ;;  %v856_v6 = vmul.f32 %v1932_v13, %v1846_v51 }
 0x291   : >> { %v1943_v33 = vsel %vm839_vm13, %v1311_v42, %v836_v24  ;;  %v843_v35 = vmul.f32 %v1313_v1, %v842_v0  ;;  %v855_v0 = vmul.f32 %v1924_v10, %v1839_v28 }
 0x292   : >> { %v865_v38 = vmul.f32 %v1943_v33, %v1943_v33 }
 0x293   : >> { %v844_v40 = vmul.f32 0.5, %v843_v35 }
 0x294   : >> { %v873_v45 = vmul.f32 %v865_v38, %v1897_v21 }
 0x295   : >> { %v845_v32 = vsub.f32 1.5, %v844_v40 }
 0x296   : >> { %v887_v46 = vsel %vm875_vm10, %v873_v45, 0.0 }
 0x297   : >> { %v846_v48 = vmul.f32 %v1313_v1, %v845_v32  ;;  %v888_v54 = vadd.f32 %v887_v46, %v886_v39 }
 0x299   : >> { %v850_v52 = vsel %vm849_vm0, %v1313_v1, %v846_v48  ;;  %v853_v1 = vmul.f32 %v1918_v2, %v1821_v15  ;;  %v857_v15 = vmul.f32 %v1943_v33, %v1853_v57 }
 0x29a   : >> { %v866_v41 = vmul.f32 %v850_v52, %v850_v52  ;;  %v858_v50 = vmul.f32 %v850_v52, %v1860_v34 }
 0x29c   : >> { %v874_v22 = vmul.f32 %v866_v41, %v1908_v61 }
 0x29e   : >> { %v889_v58 = vsel %vm875_vm10, %v874_v22, 0.0 }
 0x29f   : >> { %v890_v60 = vadd.f32 %v889_v58, %v888_v54 }
 0x2a1   : >> { %891 = vadd.xlane.f32.xlu2 %v890_v60 }
 0x314   : >> { %v892_v21 = vpop.xlane.xlu2 %891 }
 0x315   : >> { %v893_v42 = vrot.slane %v892_v21, 4 }
 0x317   : >> { %v894_v37 = vadd.f32 %v893_v42, %v892_v21 }
 0x319   : >> { %v895_v56 = vrot.slane %v894_v37, 2 }
 0x31b   : >> { %v896_v59 = vadd.f32 %v895_v56, %v894_v37 }
 0x31d   : >> { %v897_v63 = vrot.slane %v896_v59, 1 }
 0x31f   : >> { %v898_v53 = vadd.f32 %v897_v63, %v896_v59 }
 0x321   : >> { %1182 = vpush %v898_v53 }
 0x352   : >> { %s1183_s10 = spop %1182 }
 0x353   : >> { %s900_s25 = smax.f32 %s1462_s12, %s1183_s10  ;;  %s1390_s10 = sshra.s32 (%p240_p1), %s949_s13, 4  ;;  %s1391_s10 = int_to_ptr.hbm [resolvable:$true] %s1390_s10 }
 0x354   : >> { %v901_v62 = vstv %s900_s25  ;;  %s1392_s12 = scalar_lea.hbm (%p240_p1), %s1391_s10, 192  ;;  %p1397_p9 = scmp.lt.s32.totalorder (%p240_p1), %s1391_s10, %s2015_s4 }
 0x355   : >> { %1314 = vrsqrt.f32 %v901_v62  ;;  %vm908_vm2 = vweird.f32 %v901_v62  ;;  %p1393_p4 = scmp.ne.s32.totalorder (%p240_p1), %s1391_s10, %s1392_s12  ;;  %p1398_p2 = scmp.lt.s32.totalorder (%p240_p1), %s1396_s19, %s1392_s12 }
 0x357   : > { %p1394_p8 = pnand (%p240_p1), %p1393_p4, %p1557_p7  ;;  %p1399_p10 = por (%p240_p1), %p1398_p2, %p1397_p9 }
 0x359   : > { %p1395_p11 = pneg (%p240_p1), %p1394_p8 }
 0x35b   : >> { %v1315_v61 = vpop.eup %1314  ;;  %p1400_p12 = pnand (%p240_p1), %p1399_p10, %p1395_p11 }
 0x35c   : >> { %v903_v8 = vmul.f32 %v1315_v61, %v901_v62  ;;  %vm909_vm1 = vweird.f32 %v1315_v61 }
 0x35d   : >> { %vm910_vm3 = vmor %vm908_vm2, %vm909_vm1 }
 0x35e   : >> { %v904_v47 = vmul.f32 %v1315_v61, %v903_v8 }
 0x360   : >> { %v905_v12 = vmul.f32 0.5, %v904_v47 }
 0x362   : >> { %v906_v11 = vsub.f32 1.5, %v905_v12 }
 0x364   : >> { %v907_v14 = vmul.f32 %v1315_v61, %v906_v11 }
 0x366   : >> { %v911_v9 = vsel %vm910_vm3, %v1315_v61, %v907_v14 }
 0x367   : >> { %1184 = vpush %v911_v9 }
 0x398   : >> { %s1185_s26 = spop %1184 }
 0x399   : >> { %v913_v24 = vstv %s1185_s26 }
 0x39a   : >> { %v914_v25 = vmul.f32 %v913_v24, %v851_v16  ;;  %v915_v19 = vmul.f32 %v913_v24, %v852_v17  ;;  %v916_v20 = vmul.f32 %v913_v24, %v853_v1  ;;  %v917_v55 = vmul.f32 %v913_v24, %v854_v18 }
 0x39b   : >> { %v918_v26 = vmul.f32 %v913_v24, %v855_v0  ;;  %v919_v27 = vmul.f32 %v913_v24, %v856_v6  ;;  %v920_v2 = vmul.f32 %v913_v24, %v857_v15  ;;  %v921_v5 = vmul.f32 %v913_v24, %v858_v50 }
 0x39c   : >> { %924 = vst [vmem:[%s923_s21] sm:$0xff] %v914_v25 }
 0x39d   : >> { %925 = vst [vmem:[%s923_s21 + $0x8] sm:$0xff] %v915_v19 }
 0x39e   : >> { %926 = vst [vmem:[%s923_s21 + $0x10] sm:$0xff] %v916_v20 }
 0x39f   : >> { %927 = vst [vmem:[%s923_s21 + $0x18] sm:$0xff] %v917_v55  ;;  %242 = sbr.rel (!%p240_p1) target bundleno = 50 (0x32), region = 94 }
 0x3a0   : >> { %928 = vst [vmem:[%s923_s21 + $0x20] sm:$0xff] %v918_v26 }
 0x3a1   : >> { %929 = vst [vmem:[%s923_s21 + $0x28] sm:$0xff] %v919_v27 }
 0x3a2   : >> { %930 = vst [vmem:[%s923_s21 + $0x30] sm:$0xff] %v920_v2 }
 0x3a3   : >> { %931 = vst [vmem:[%s923_s21 + $0x38] sm:$0xff] %v921_v5 }
 0x3a4   : > { %1403 = shalt.err (!%p1400_p12)
}
 0x3a5   : > { %s1463_s20 = smov 128   ;;  %s1464_s30 = smov 8  }
 0x3a6   : > { %1192 = dma.vmem_to_hbm [thread:$0]  (%p1557_p7), %s947_s28, 3072, %s949_s13, %s933_s14, %s1463_s20, %s1463_s20, %s1464_s30  }
 0x3a7 PF: > { %s963_s26 = sand.u32 1, %s1438_s15   ;;  %p2021_p13 = scmp.ge.s32.totalorder %s1450_s18, 2 }
 0x3a8   : > { %s964_s21 = scalar_lea.sflag [#allocation4], %s963_s26 }
 0x3a9   : > { %p1203_p0 = pnand %p2021_p13, %p1525_p6 }
 0x3ab   : > { %p1204_p3 = pneg %p1203_p0 }
 0x3ad   : > { %1433 = dma.done.wait (%p1204_p3), %s964_s21, 3072  }
 0x3ae   : > { %1435 = vsyncadd (%p1204_p3), %s964_s21, 4294964224  ;;  %p18_p5 = scmp.ge.s32.totalorder %s1543_s29, 4   ;;  %s2022_s15 = smov %s1442_s16 }
 0x3af   : > { %s2023_s16 = smov %s1446_s17  ;;  %s2024_s17 = smov %s1553_s8 }
 0x3b0   : > { %s2025_s18 = smov %s1543_s29  ;;  %20 = sbr.rel (!%p18_p5) target bundleno = 6 (0x6), region = 105 }
 0x3b5   :  { %970 = vsyncpa [#allocation3], 1 }
 0x3b6   :  { %972 = vsyncpa [#allocation3 + $0x1], 1 }
 0x3b7   :  { %973 = vsyncpa [#allocation6], 1 }
 0x3b8   :  { %974 = vsyncpa [#allocation4], 1 }
 0x3b9   :  { %976 = vsyncpa [#allocation4 + $0x1], 1 }

</bundles_post_ra>
